<compile_context>
chip_gen: v7x
topology: tpu7x:2x2x1
jax: 0.10.0
libtpu: 0.0.40
codegen_flags: <defaults>
</compile_context>

<pallas_src>
import jax
import jax.numpy as jnp
from jax import lax
from jax.experimental import pallas as pl
from jax.experimental.pallas import tpu as pltpu

LANE = 128


def _dice_sums_kernel(score_ref, target_ref, out_ref, inter_ref, ssq_ref, tsq_ref):
    t = pl.program_id(1)

    @pl.when(t == 0)
    def _():
        inter_ref[...] = jnp.zeros_like(inter_ref)
        ssq_ref[...] = jnp.zeros_like(ssq_ref)
        tsq_ref[...] = jnp.zeros_like(tsq_ref)

    score = score_ref[...].astype(jnp.float32)        # (C, ts, 128), cast per-tile in VMEM
    tgt = target_ref[...]                             # (1, ts, 128) int32

    class_ids = lax.broadcasted_iota(jnp.int32, score.shape, 0)
    onehot = (tgt == class_ids).astype(jnp.float32)   # (C, ts, 128) one-hot of labels

    def _rsum(x):                                     # (C, ts, 128) -> (C, 1)
        return jnp.sum(jnp.sum(x, axis=1), axis=1, keepdims=True)

    inter_ref[...] += _rsum(score * onehot)
    ssq_ref[...] += _rsum(score * score)
    tsq_ref[...] += _rsum(onehot)                     # onehot is 0/1 -> square == itself

    @pl.when(t == pl.num_programs(1) - 1)
    def _():
        out_ref[...] = jnp.concatenate(
            [inter_ref[...], ssq_ref[...], tsq_ref[...]], axis=1)


def _round_up(x, m):
    return -(-x // m) * m


def dice_loss(inputs, target, weight=None, softmax=False, *, tile_sublanes=64):
    """Pallas TPU implementation of DiceLoss.forward (n_classes == inputs.shape[1])."""
    B, C, H, W = inputs.shape
    assert target.shape == (B, 1, H, W), "predict & target shape do not match"
    if softmax:
        inputs = jax.nn.softmax(inputs, axis=1)

    hw = H * W
    rows = -(-hw // LANE)                      # 128-lane rows needed for the spatial axis
    tile_s = max(8, (tile_sublanes // 8) * 8)  # sublane tile, multiple of 8
    if rows < tile_s:
        tile_s = _round_up(rows, 8)            # one reduction step covers everything
    rows_pad = _round_up(rows, tile_s)
    nt = rows_pad // tile_s
    pad = rows_pad * LANE - hw

    # Free views of the NCHW tensors (no transpose, no dtype upcast in HBM). Padding
    # is exact: score pad = 0 adds nothing to inter/ssq, label pad = -1 hits no class.
    score = inputs.reshape(B, C, hw)
    tgt = target.astype(jnp.int32).reshape(B, 1, hw)
    if pad:
        score = jnp.pad(score, ((0, 0), (0, 0), (0, pad)))
        tgt = jnp.pad(tgt, ((0, 0), (0, 0), (0, pad)), constant_values=-1)
    score = score.reshape(B, C, rows_pad, LANE)
    tgt = tgt.reshape(B, 1, rows_pad, LANE)

    # Double-buffered VMEM footprint; only raise the scoped limit when we'd exceed
    # the default (keeps the same code valid on v5e/v6e/v7x).
    blk_bytes = tile_s * LANE * (C * score.dtype.itemsize + 4)
    cp = dict(dimension_semantics=("parallel", "arbitrary"))
    if 2 * blk_bytes > (14 << 20):
        cp["vmem_limit_bytes"] = int(min(2 * blk_bytes + (8 << 20), 100 << 20))

    sums = pl.pallas_call(
        _dice_sums_kernel,
        out_shape=jax.ShapeDtypeStruct((B, C, 3), jnp.float32),
        grid_spec=pltpu.PrefetchScalarGridSpec(
            num_scalar_prefetch=0,
            grid=(B, nt),
            in_specs=[
                pl.BlockSpec((None, C, tile_s, LANE), lambda b, t: (b, 0, t, 0)),
                pl.BlockSpec((None, 1, tile_s, LANE), lambda b, t: (b, 0, t, 0)),
            ],
            out_specs=pl.BlockSpec((None, C, 3), lambda b, t: (b, 0, 0)),
            scratch_shapes=[pltpu.VMEM((C, 1), jnp.float32)] * 3,
        ),
        compiler_params=pltpu.CompilerParams(**cp),
    )(score, tgt)

    per_class = jnp.sum(sums, axis=0)          # combine per-batch partials -> (C, 3)
    inter, ssq, tsq = per_class[:, 0], per_class[:, 1], per_class[:, 2]
    smooth = 1e-10
    # Matches torch _dice_loss exactly: loss = 1 - inter / (ssq + tsq + smooth)
    dice = 1.0 - inter / (ssq + tsq + smooth)

    if weight is None:
        weight = jnp.ones((C,), jnp.float32)
    else:
        weight = jnp.asarray(weight, jnp.float32)
    return jnp.sum(dice * weight) / C


def dice_loss_ref(inputs, target, n_classes, weight=None, softmax=False):
    """Pure-JAX reference mirroring the PyTorch module exactly."""
    if softmax:
        inputs = jax.nn.softmax(inputs, axis=1)
    labels = target[:, 0]
    loss = 0.0
    smooth = 1e-10
    for i in range(n_classes):
        score = inputs[:, i].astype(jnp.float32)
        t = (labels == i).astype(jnp.float32)
        inter = jnp.sum(score * t)
        union = jnp.sum(score * score) + jnp.sum(t * t) + smooth
        w = 1.0 if weight is None else weight[i]
        loss = loss + (1.0 - inter / union) * w
    return loss / n_classes


if __name__ == "__main__":
    key = jax.random.PRNGKey(0)
    k_logits, k_labels, k_logits2, k_labels2 = jax.random.split(key, 4)

    # Main test: B=2, C=4, 16x16
    B, C, H, W = 2, 4, 16, 16
    logits = jax.random.normal(k_logits, (B, C, H, W), dtype=jnp.float32)
    probs = jax.nn.softmax(logits, axis=1)                      # NCHW probabilities
    labels = jax.random.randint(k_labels, (B, 1, H, W), 0, C, dtype=jnp.int32)

    out = jax.block_until_ready(dice_loss(probs, labels))       # softmax=False path
    ref = dice_loss_ref(probs, labels, C)
    assert jnp.abs(out - ref) < 1e-5, (out, ref)

    out_sm = jax.block_until_ready(dice_loss(logits, labels, softmax=True))
    ref_sm = dice_loss_ref(logits, labels, C, softmax=True)
    assert jnp.abs(out_sm - ref_sm) < 1e-5, (out_sm, ref_sm)

    w = jnp.array([0.5, 1.0, 1.5, 2.0], jnp.float32)
    out_w = jax.block_until_ready(dice_loss(probs, labels, weight=w))
    ref_w = dice_loss_ref(probs, labels, C, weight=w)
    assert jnp.abs(out_w - ref_w) < 1e-5, (out_w, ref_w)

    # Ragged-shape test (exercises the pad-with-(0, -1) path): B=1, C=3, 7x9
    B2, C2, H2, W2 = 1, 3, 7, 9
    logits2 = jax.random.normal(k_logits2, (B2, C2, H2, W2), dtype=jnp.float32)
    probs2 = jax.nn.softmax(logits2, axis=1)
    labels2 = jax.random.randint(k_labels2, (B2, 1, H2, W2), 0, C2, dtype=jnp.int32)
    out2 = jax.block_until_ready(dice_loss(probs2, labels2))
    ref2 = dice_loss_ref(probs2, labels2, C2)
    assert jnp.abs(out2 - ref2) < 1e-5, (out2, ref2)

    print("KERNEL_OK")
</pallas_src>

<mosaic_0001>
module attributes {stable_mosaic.version = 11 : i64} {
  func.func @_dice_sums_kernel(%arg0: i32, %arg1: i32, %arg2: memref<1x4x8x128xf32, #tpu.memory_space<vmem>>, %arg3: memref<1x1x8x128xi32, #tpu.memory_space<vmem>>, %arg4: memref<1x4x3xf32, #tpu.memory_space<vmem>>, %arg5: memref<4x1xf32, #tpu.memory_space<vmem>>, %arg6: memref<4x1xf32, #tpu.memory_space<vmem>>, %arg7: memref<4x1xf32, #tpu.memory_space<vmem>>) attributes {dimension_semantics = [#tpu.dimension_semantics<parallel>, #tpu.dimension_semantics<arbitrary>], iteration_bounds = array<i64: 2, 1>, scalar_prefetch = 0 : i64, scratch_operands = 3 : i64, tpu.core_type = #tpu.core_type<tc>, window_params = [{transform_indices = @transform_0, window_bounds = array<i64: 1, 4, 8, 128>}, {transform_indices = @transform_1, window_bounds = array<i64: 1, 1, 8, 128>}, {transform_indices = @transform_2, window_bounds = array<i64: 1, 4, 3>}]} {
    %c0_i32 = arith.constant 0 : i32
    %0 = arith.cmpi eq, %arg1, %c0_i32 : i32
    %1 = arith.extui %0 : i1 to i32
    %c0_i32_0 = arith.constant 0 : i32
    %2 = arith.cmpi ne, %1, %c0_i32_0 : i32
    scf.if %2 {
      %cst_27 = arith.constant 0.000000e+00 : f32
      %35 = vector.broadcast %cst_27 : f32 to vector<4x1xf32>
      %c0_28 = arith.constant 0 : index
      %c0_29 = arith.constant 0 : index
      %36 = vector.load %arg5[%c0_28, %c0_29] : memref<4x1xf32, #tpu.memory_space<vmem>>, vector<4x1xf32>
      tpu.vector_store %arg5[%c0_28, %c0_29], %35 {strides = array<i32>} : memref<4x1xf32, #tpu.memory_space<vmem>>, vector<4x1xf32>,
      %cst_30 = arith.constant 0.000000e+00 : f32
      %37 = vector.broadcast %cst_30 : f32 to vector<4x1xf32>
      %c0_31 = arith.constant 0 : index
      %c0_32 = arith.constant 0 : index
      %38 = vector.load %arg6[%c0_31, %c0_32] : memref<4x1xf32, #tpu.memory_space<vmem>>, vector<4x1xf32>
      tpu.vector_store %arg6[%c0_31, %c0_32], %37 {strides = array<i32>} : memref<4x1xf32, #tpu.memory_space<vmem>>, vector<4x1xf32>,
      %cst_33 = arith.constant 0.000000e+00 : f32
      %39 = vector.broadcast %cst_33 : f32 to vector<4x1xf32>
      %c0_34 = arith.constant 0 : index
      %c0_35 = arith.constant 0 : index
      %40 = vector.load %arg7[%c0_34, %c0_35] : memref<4x1xf32, #tpu.memory_space<vmem>>, vector<4x1xf32>
      tpu.vector_store %arg7[%c0_34, %c0_35], %39 {strides = array<i32>} : memref<4x1xf32, #tpu.memory_space<vmem>>, vector<4x1xf32>,
    } else {
    }
    %c0 = arith.constant 0 : index
    %c0_1 = arith.constant 0 : index
    %c0_2 = arith.constant 0 : index
    %c0_3 = arith.constant 0 : index
    %3 = vector.load %arg2[%c0, %c0_1, %c0_2, %c0_3] : memref<1x4x8x128xf32, #tpu.memory_space<vmem>>, vector<1x4x8x128xf32>
    %4 = vector.shape_cast %3 : vector<1x4x8x128xf32> to vector<4x8x128xf32>
    %c0_4 = arith.constant 0 : index
    %c0_5 = arith.constant 0 : index
    %c0_6 = arith.constant 0 : index
    %c0_7 = arith.constant 0 : index
    %5 = vector.load %arg3[%c0_4, %c0_5, %c0_6, %c0_7] : memref<1x1x8x128xi32, #tpu.memory_space<vmem>>, vector<1x1x8x128xi32>
    %6 = vector.shape_cast %5 : vector<1x1x8x128xi32> to vector<1x8x128xi32>
    %7 = tpu.iota {dimensions = array<i32: 0>} : vector<4x8x128xi32>
    %8 = vector.broadcast %6 : vector<1x8x128xi32> to vector<4x8x128xi32>
    %9 = arith.cmpi eq, %8, %7 : vector<4x8x128xi32>
    %10 = arith.extui %9 : vector<4x8x128xi1> to vector<4x8x128xi32>
    %11 = arith.sitofp %10 : vector<4x8x128xi32> to vector<4x8x128xf32>
    %c0_8 = arith.constant 0 : index
    %c0_9 = arith.constant 0 : index
    %12 = vector.load %arg5[%c0_8, %c0_9] : memref<4x1xf32, #tpu.memory_space<vmem>>, vector<4x1xf32>
    %13 = arith.mulf %4, %11 : vector<4x8x128xf32>
    %cst = arith.constant dense<0.000000e+00> : vector<4x128xf32>
    %14 = vector.multi_reduction <add>, %13, %cst [1] : vector<4x8x128xf32> to vector<4x128xf32>
    %cst_10 = arith.constant dense<0.000000e+00> : vector<4xf32>
    %15 = vector.multi_reduction <add>, %14, %cst_10 [1] : vector<4x128xf32> to vector<4xf32>
    %16 = vector.shape_cast %15 : vector<4xf32> to vector<4x1xf32>
    %17 = arith.addf %12, %16 : vector<4x1xf32>
    %c0_11 = arith.constant 0 : index
    %c0_12 = arith.constant 0 : index
    %18 = vector.load %arg5[%c0_11, %c0_12] : memref<4x1xf32, #tpu.memory_space<vmem>>, vector<4x1xf32>
    tpu.vector_store %arg5[%c0_11, %c0_12], %17 {strides = array<i32>} : memref<4x1xf32, #tpu.memory_space<vmem>>, vector<4x1xf32>,
    %c0_13 = arith.constant 0 : index
    %c0_14 = arith.constant 0 : index
    %19 = vector.load %arg6[%c0_13, %c0_14] : memref<4x1xf32, #tpu.memory_space<vmem>>, vector<4x1xf32>
    %20 = arith.mulf %4, %4 : vector<4x8x128xf32>
    %cst_15 = arith.constant dense<0.000000e+00> : vector<4x128xf32>
    %21 = vector.multi_reduction <add>, %20, %cst_15 [1] : vector<4x8x128xf32> to vector<4x128xf32>
    %cst_16 = arith.constant dense<0.000000e+00> : vector<4xf32>
    %22 = vector.multi_reduction <add>, %21, %cst_16 [1] : vector<4x128xf32> to vector<4xf32>
    %23 = vector.shape_cast %22 : vector<4xf32> to vector<4x1xf32>
    %24 = arith.addf %19, %23 : vector<4x1xf32>
    %c0_17 = arith.constant 0 : index
    %c0_18 = arith.constant 0 : index
    %25 = vector.load %arg6[%c0_17, %c0_18] : memref<4x1xf32, #tpu.memory_space<vmem>>, vector<4x1xf32>
    tpu.vector_store %arg6[%c0_17, %c0_18], %24 {strides = array<i32>} : memref<4x1xf32, #tpu.memory_space<vmem>>, vector<4x1xf32>,
    %c0_19 = arith.constant 0 : index
    %c0_20 = arith.constant 0 : index
    %26 = vector.load %arg7[%c0_19, %c0_20] : memref<4x1xf32, #tpu.memory_space<vmem>>, vector<4x1xf32>
    %cst_21 = arith.constant dense<0.000000e+00> : vector<4x128xf32>
    %27 = vector.multi_reduction <add>, %11, %cst_21 [1] : vector<4x8x128xf32> to vector<4x128xf32>
    %cst_22 = arith.constant dense<0.000000e+00> : vector<4xf32>
    %28 = vector.multi_reduction <add>, %27, %cst_22 [1] : vector<4x128xf32> to vector<4xf32>
    %29 = vector.shape_cast %28 : vector<4xf32> to vector<4x1xf32>
    %30 = arith.addf %26, %29 : vector<4x1xf32>
    %c0_23 = arith.constant 0 : index
    %c0_24 = arith.constant 0 : index
    %31 = vector.load %arg7[%c0_23, %c0_24] : memref<4x1xf32, #tpu.memory_space<vmem>>, vector<4x1xf32>
    tpu.vector_store %arg7[%c0_23, %c0_24], %30 {strides = array<i32>} : memref<4x1xf32, #tpu.memory_space<vmem>>, vector<4x1xf32>,
    %c0_i32_25 = arith.constant 0 : i32
    %32 = arith.cmpi eq, %arg1, %c0_i32_25 : i32
    %33 = arith.extui %32 : i1 to i32
    %c0_i32_26 = arith.constant 0 : i32
    %34 = arith.cmpi ne, %33, %c0_i32_26 : i32
    scf.if %34 {
      %c0_27 = arith.constant 0 : index
      %c0_28 = arith.constant 0 : index
      %35 = vector.load %arg5[%c0_27, %c0_28] : memref<4x1xf32, #tpu.memory_space<vmem>>, vector<4x1xf32>
      %c0_29 = arith.constant 0 : index
      %c0_30 = arith.constant 0 : index
      %36 = vector.load %arg6[%c0_29, %c0_30] : memref<4x1xf32, #tpu.memory_space<vmem>>, vector<4x1xf32>
      %c0_31 = arith.constant 0 : index
      %c0_32 = arith.constant 0 : index
      %37 = vector.load %arg7[%c0_31, %c0_32] : memref<4x1xf32, #tpu.memory_space<vmem>>, vector<4x1xf32>
      %38 = tpu.concatenate %35, %36, %37 in 1 : vector<4x1xf32>, vector<4x1xf32>, vector<4x1xf32> -> vector<4x3xf32>
      %c0_33 = arith.constant 0 : index
      %c0_34 = arith.constant 0 : index
      %c0_35 = arith.constant 0 : index
      %39 = vector.load %arg4[%c0_33, %c0_34, %c0_35] : memref<1x4x3xf32, #tpu.memory_space<vmem>>, vector<1x4x3xf32>
      %40 = vector.shape_cast %39 : vector<1x4x3xf32> to vector<4x3xf32>
      %41 = vector.shape_cast %38 : vector<4x3xf32> to vector<1x4x3xf32>
      tpu.vector_store %arg4[%c0_33, %c0_34, %c0_35], %41 {strides = array<i32>} : memref<1x4x3xf32, #tpu.memory_space<vmem>>, vector<1x4x3xf32>,
    } else {
    }
    return
  }
  func.func @transform_0(%arg0: i32, %arg1: i32) -> (i32, i32, i32, i32) {
    %c0_i32 = arith.constant 0 : i32
    %c0_i32_0 = arith.constant 0 : i32
    %c0_i32_1 = arith.constant 0 : i32
    return %arg0, %c0_i32, %arg1, %c0_i32_0 : i32, i32, i32, i32
  }
  func.func @transform_1(%arg0: i32, %arg1: i32) -> (i32, i32, i32, i32) {
    %c0_i32 = arith.constant 0 : i32
    %c0_i32_0 = arith.constant 0 : i32
    %c0_i32_1 = arith.constant 0 : i32
    return %arg0, %c0_i32, %arg1, %c0_i32_0 : i32, i32, i32, i32
  }
  func.func @transform_2(%arg0: i32, %arg1: i32) -> (i32, i32, i32) {
    %c0_i32 = arith.constant 0 : i32
    %c0_i32_0 = arith.constant 0 : i32
    %c0_i32_1 = arith.constant 0 : i32
    return %arg0, %c0_i32, %c0_i32_0 : i32, i32, i32
  }
}

</mosaic_0001>

<bundles_post_ra>
// kernel: tpu_custom_call.1
= control target key start
LH: loop header
LB: loop body
LE: loop exit
PB: predicated region body
PF: predicated region fallthrough
CT: control target
= control target key end

     0   :  { %7 = vsyncpa [#allocation6], 0  ;;  %s913_s0 = inlined_call_operand.hbm [shape: f32[2,4,8,128], index: 0, kind: input, shape index: {}]   ;;  %s914_s1 = inlined_call_operand.hbm [shape: s32[2,1,8,128], index: 1, kind: input, shape index: {}]   ;;  %s915_s2 = inlined_call_operand.vmem [shape: f32[2,4,3], index: 2, kind: output, shape index: {}]  }
   0x1   :  { %9 = vsyncpa [#allocation6 + $0x1], 0 }
   0x2   :  { %10 = vsyncpa [#allocation8], 0 }
   0x3   :  { %12 = vsyncpa [#allocation8 + $0x1], 0  ;;  %s711_s9 = smov 0   ;;  %s713_s10 = smov 0  }
   0x4   :  { %s715_s11 = smov 0   ;;  %s717_s12 = smov 0  }
   0x5   :  { %s719_s13 = smov 0   ;;  %s721_s14 = smov 0  }
   0x6 LB: > { %s488_s15 = sadd.s32 4294967295, %s687_s14   ;;  %s30_s16 = sadd.s32 1, %s683_s13  ;;  %s687_s14 = sphi %s721_s14, %s18_s14   ;;  %s683_s13 = sphi %s719_s13, %s927_s13   ;;  %s679_s12 = sphi %s717_s12, %s926_s12   ;;  %s675_s11 = sphi %s715_s11, %s925_s11   ;;  %s671_s10 = sphi %s713_s10, %s924_s10   ;;  %s667_s9 = sphi %s711_s9, %s923_s9  }
   0x7   : > { %p32_p0 = scmp.ge.s32.totalorder %s30_s16, 2  ;;  %s39_s17 = sadd.s32 1, %s675_s11 }
   0x8   : > { %p46_p1 = scmp.ne.s32.totalorder %s675_s11, %s671_s10  ;;  %p47_p2 = scmp.eq.s32.totalorder %s687_s14, 0 }
   0x9   : > { %s929_s16 = smov (%p32_p0, %s30_s16), 0  ;;  %p52_p4 = scmp.ne.s32.totalorder %s671_s10, %s667_s9 }
   0xa   : > { %p747_p3 = por %p47_p2, %p46_p1  ;;  %s34_s19 = ssub.s32 %s683_s13, %s929_s16 }
   0xb   : > { %p53_p5 = scmp.eq.s32.totalorder %s488_s15, 0  ;;  %p37_p6 = scmp.eq.s32.totalorder %s34_s19, 0 }
   0xc   : > { %p519_p8 = scmp.lt.s32.totalorder %s687_s14, 2  ;;  %s763_s22 = sand.u32 1, %s675_s11  }
   0xd   : > { %p754_p7 = por %p53_p5, %p52_p4  ;;  %s507_s23 = sshll.u32 %s683_s13, 9 }
   0xe   : > { %s760_s21 = scalar_select %p37_p6, %s675_s11, %s39_s17  }
   0xf   : > { %s918_s20 = scalar_select %p754_p7, 1, 0 }
  0x10   : > { %s492_s24 = sshll.u32 %s763_s22, 5  ;;  %s770_s27 = scalar_lea.hbm %s913_s0, %s507_s23 }
  0x11   : > { %s134_s28 = scalar_lea.vmem [#allocation5], %s492_s24  ;;  %p774_p9 = pnand %p519_p8, %p747_p3 }
  0x12   : > { %s142_s29 = sshll.u32 %s134_s28, 4  ;;  %s131_s3 = scalar_lea.sflag [#allocation6], %s763_s22  ;;  %s778_s29 = int_to_ptr.vmem [resolvable:$true] %s142_s29 }
  0x13   : > { %s573_s4 = scalar_lea.hbm %s770_s27, 512  ;;  %p575_p11 = pneg %p774_p9 }
  0x14   : > { %p574_p10 = scmp.ne.s32.totalorder %s770_s27, %s573_s4  ;;  %s578_s7 = scalar_lea.hbm %s913_s0, 1024 }
  0x15   : > { %p579_p0 = scmp.lt.u32.totalorder %s770_s27, %s913_s0  ;;  %p580_p1 = scmp.lt.u32.totalorder %s578_s7, %s573_s4 }
  0x16   : > { %p576_p12 = pnand %p575_p11, %p574_p10  ;;  %p582_p3 = scmp.lt.u32.totalorder %s573_s4, %s770_s27 }
  0x17   : > { %p581_p2 = por %p580_p1, %p579_p0 }
  0x18   : > { %p577_p13 = pneg %p576_p12 }
  0x19   : > { %p583_p4 = por %p582_p3, %p581_p2 }
  0x1b   : > { %p584_p5 = pnand %p583_p4, %p577_p13 }
  0x1d   : > { %587 = shalt.err (!%p584_p5)
}
  0x1e   : > { %s588_s15 = scalar_lea.vmem %s778_s29, 512  ;;  %s689_s17 = smov [#allocation5]  }
  0x1f   : > { %p589_p6 = scmp.ne.s32.totalorder %s778_s29, %s588_s15  ;;  %s593_s18 = sshll.u32 %s689_s17, 4  ;;  %s594_s18 = int_to_ptr.vmem [resolvable:$false] %s593_s18 }
  0x20   : > { %s595_s19 = scalar_lea.vmem %s594_s18, 1024  ;;  %p596_p12 = scmp.lt.s32.totalorder %s778_s29, %s594_s18 }
  0x21   : > { %p591_p8 = pnand %p589_p6, %p575_p11  ;;  %p597_p0 = scmp.lt.s32.totalorder %s595_s19, %s588_s15 }
  0x23   : > { %p592_p10 = pneg %p591_p8  ;;  %p598_p1 = por %p597_p0, %p596_p12 }
  0x25   : > { %p599_p2 = pnand %p598_p1, %p592_p10 }
  0x27   : > { %602 = shalt.err (!%p599_p2)
}
  0x28   : > { %s690_s23 = smov 128   ;;  %s691_s24 = smov 8  }
  0x29   : > { %515 = dma.hbm_to_vmem [thread:$0]  (!%p774_p9), %s770_s27, 512, %s778_s29, %s131_s3, %s690_s23, %s690_s23, %s691_s24  }
  0x2a   : > { %p497_p13 = scmp.ge.s32.totalorder %s687_s14, 1  ;;  %p169_p3 = scmp.lt.s32.totalorder %s687_s14, 3 }
  0x2b   : > { %s495_s25 = sshll.u32 %s763_s22, 3  ;;  %s496_s28 = sshll.u32 %s683_s13, 7 }
  0x2c   : > { %p811_p4 = pnand %p497_p13, %p169_p3  ;;  %s156_s4 = scalar_lea.vmem [#allocation7], %s495_s25 }
  0x2d   : > { %s164_s5 = sshll.u32 %s156_s4, 4  ;;  %s819_s8 = scalar_lea.hbm %s914_s1, %s496_s28  ;;  %s165_s5 = int_to_ptr.vmem [resolvable:$true] %s164_s5 }
  0x2e   : > { %s920_s26 = scalar_select %p811_p4, 1, 0 }
  0x2f   : > { %s153_s27 = scalar_lea.sflag [#allocation8], %s763_s22  ;;  %s603_s29 = scalar_lea.hbm %s819_s8, 128 }
  0x30   : > { %p604_p5 = scmp.ne.s32.totalorder %s819_s8, %s603_s29  ;;  %s608_s15 = scalar_lea.hbm %s914_s1, 256 }
  0x31   : > { %p609_p10 = scmp.lt.u32.totalorder %s819_s8, %s914_s1  ;;  %p610_p12 = scmp.lt.u32.totalorder %s608_s15, %s603_s29 }
  0x32   : > { %p606_p6 = pnand %p604_p5, %p575_p11  ;;  %p612_p1 = scmp.lt.u32.totalorder %s603_s29, %s819_s8 }
  0x33   : > { %p611_p0 = por %p610_p12, %p609_p10 }
  0x34   : > { %p607_p8 = pneg %p606_p6 }
  0x35   : > { %p613_p2 = por %p612_p1, %p611_p0 }
  0x37   : > { %p614_p13 = pnand %p613_p2, %p607_p8 }
  0x39   : > { %617 = shalt.err (!%p614_p13)
}
  0x3a   : > { %s618_s22 = scalar_lea.vmem %s165_s5, 128  ;;  %s692_s19 = smov [#allocation7]  }
  0x3b   : > { %p619_p3 = scmp.ne.s32.totalorder %s165_s5, %s618_s22  ;;  %s623_s23 = sshll.u32 %s692_s19, 4  ;;  %s624_s23 = int_to_ptr.vmem [resolvable:$false] %s623_s23 }
  0x3c   : > { %s625_s24 = scalar_lea.vmem %s624_s23, 256  ;;  %p626_p7 = scmp.lt.s32.totalorder %s165_s5, %s624_s23 }
  0x3d   : > { %p621_p5 = pnand %p619_p3, %p575_p11  ;;  %p627_p4 = scmp.lt.s32.totalorder %s625_s24, %s618_s22 }
  0x3f   : > { %p622_p6 = pneg %p621_p5  ;;  %p628_p10 = por %p627_p4, %p626_p7 }
  0x41   : > { %p629_p12 = pnand %p628_p10, %p622_p6 }
  0x43   : > { %632 = shalt.err (!%p629_p12)
}
  0x44   : > { %518 = dma.hbm_to_vmem [thread:$0]  (!%p774_p9), %s819_s8, 128, %s165_s5, %s153_s27  }
  0x45   : > { %p921_p8 = scmp.ne.s32.totalorder %s920_s26, 0 }
  0x46   : > { %s175_s25 = sand.u32 (!%p921_p8), 1, %s671_s10   ;;  %p922_p11 = scmp.ne.s32.totalorder (!%p921_p8), %s918_s20, 0 }
  0x47   : > { %173 = sbr.rel (%p921_p8) target bundleno = 375 (0x177), region = 28  ;;  %s498_s28 = sshll.u32 (!%p921_p8), %s175_s25, 5 }
  0x48   : > { %s176_s4 = scalar_lea.sflag (!%p921_p8), [#allocation6], %s175_s25  ;;  %s179_s6 = scalar_lea.vmem (!%p921_p8), [#allocation5], %s498_s28 }
  0x4e   : > { %658 = dma.done.wait (%p922_p11), %s176_s4, 512  }
  0x4f   : > { %660 = vsyncadd (%p922_p11), %s176_s4, 4294966784  ;;  %s499_s7 = sshll.u32 %s175_s25, 3  ;;  %s185_s29 = scalar_lea.sflag [#allocation8], %s175_s25 }
  0x50   : > { %s188_s30 = scalar_lea.vmem [#allocation7], %s499_s7 }
  0x51   : > { %662 = dma.done.wait (%p922_p11), %s185_s29, 128  }
  0x52   : > { %664 = vsyncadd (%p922_p11), %s185_s29, 4294967168  ;;  %vm221_vm0 = vcmask 3072   ;;  %v693_v0 = vmov 0.0   ;;  %v855_v1 = vld [vmem:[%s179_s6] sm:$0xff]  ;;  %v857_v2 = vld [vmem:[%s179_s6 + $0x8] sm:$0xff]  ;;  %vm275_vm5 = vcmask 1041409  }
  0x53   : > { %223 = vst.msk [vmem:[#allocation3] sm:$0xf] %vm221_vm0, %v693_v0  ;;  %222 = vst.msk [vmem:[#allocation2] sm:$0xf] %vm221_vm0, %v693_v0  ;;  %v859_v3 = vld [vmem:[%s179_s6 + $0x10] sm:$0xff]  ;;  %v861_v4 = vld [vmem:[%s179_s6 + $0x18] sm:$0xff]  ;;  %v290_v5 = vmul.f32 %v855_v1, %v855_v1  ;;  %v291_v6 = vmul.f32 %v857_v2, %v857_v2 }
  0x54   : > { %224 = vst.msk [vmem:[#allocation4] sm:$0xf] %vm221_vm0, %v693_v0  ;;  %v292_v7 = vmul.f32 %v859_v3, %v859_v3  ;;  %v229_v8 = vld [vmem:[%s188_s30] sm:$0xff]  ;;  %v293_v9 = vmul.f32 %v861_v4, %v861_v4  ;;  %vm277_vm6 = vcmask 1042434   ;;  %vm279_vm7 = vcmask 1043459   ;;  %s694_s20 = smov 1  }
  0x55   : > { %vm230_vm1 = vcmp.eq.s32.totalorder %v229_v8, 0  ;;  %vm231_vm2 = vcmp.eq.s32.totalorder %v229_v8, 1  ;;  %vm232_vm3 = vcmp.eq.s32.totalorder %v229_v8, 2  ;;  %v294_v10 = vrot.slane %v290_v5, 4  ;;  %s695_s26 = smov 2   ;;  %p213_p7 = scmp.lt.s32.totalorder %s679_s12, 1 }
  0x56   : > { %v300_v11 = vrot.slane %v291_v6, 4  ;;  %v306_v12 = vrot.slane %v292_v7, 4  ;;  %vm233_vm4 = vcmp.eq.s32.totalorder %v229_v8, 3  ;;  %v312_v13 = vrot.slane %v293_v9, 4 }
  0x57   : > { %v501_v14 = vsel %vm230_vm1, 1.0, %v693_v0  ;;  %v502_v15 = vsel %vm231_vm2, 1.0, %v693_v0  ;;  %v503_v16 = vsel %vm232_vm3, 1.0, %v693_v0  ;;  %v295_v17 = vadd.f32 %v294_v10, %v290_v5  ;;  %s931_s12 = smov (!%p213_p7, %s679_s12), 1 }
  0x58   : > { %v301_v18 = vadd.f32 %v300_v11, %v291_v6  ;;  %v307_v19 = vadd.f32 %v306_v12, %v292_v7  ;;  %v504_v20 = vsel %vm233_vm4, 1.0, %v693_v0  ;;  %v313_v21 = vadd.f32 %v312_v13, %v293_v9  ;;  %s500_s5 = sshll.u32 %s931_s12, 2 }
  0x59   : > { %v332_v22 = vrot.slane %v501_v14, 4  ;;  %v338_v23 = vrot.slane %v502_v15, 4  ;;  %v344_v24 = vrot.slane %v503_v16, 4  ;;  %vm282_vm8 = vcmask 1043456   ;;  %s216_s3 = scalar_lea.vmem %s915_s2, %s500_s5 }
  0x5a   : > { %v296_v25 = vrot.slane %v295_v17, 2  ;;  %v302_v26 = vrot.slane %v301_v18, 2  ;;  %v308_v27 = vrot.slane %v307_v19, 2  ;;  %v350_v28 = vrot.slane %v504_v20, 4 }
  0x5b   : > { %v314_v29 = vrot.slane %v313_v21, 2  ;;  %v333_v30 = vadd.f32 %v501_v14, %v332_v22  ;;  %v339_v31 = vadd.f32 %v502_v15, %v338_v23  ;;  %v345_v32 = vadd.f32 %v503_v16, %v344_v24 }
  0x5c   : > { %v297_v33 = vadd.f32 %v296_v25, %v295_v17  ;;  %v303_v34 = vadd.f32 %v302_v26, %v301_v18  ;;  %v309_v35 = vadd.f32 %v308_v27, %v307_v19  ;;  %v351_v36 = vadd.f32 %v504_v20, %v350_v28 }
  0x5d   : > { %v315_v37 = vadd.f32 %v314_v29, %v313_v21  ;;  %v334_v38 = vrot.slane %v333_v30, 2  ;;  %v340_v39 = vrot.slane %v339_v31, 2  ;;  %v346_v40 = vrot.slane %v345_v32, 2 }
  0x5e   : > { %v298_v41 = vrot.slane %v297_v33, 1  ;;  %v304_v42 = vrot.slane %v303_v34, 1  ;;  %v310_v43 = vrot.slane %v309_v35, 1  ;;  %v352_v44 = vrot.slane %v351_v36, 2 }
  0x5f   : > { %v316_v45 = vrot.slane %v315_v37, 1  ;;  %v335_v46 = vadd.f32 %v334_v38, %v333_v30  ;;  %v341_v47 = vadd.f32 %v340_v39, %v339_v31  ;;  %v347_v48 = vadd.f32 %v346_v40, %v345_v32  ;;  %v289_v38 = vld [vmem:[#allocation3] sm:$0xf] }
  0x60   : > { %v299_v49 = vadd.f32 %v298_v41, %v297_v33  ;;  %v305_v50 = vadd.f32 %v304_v42, %v303_v34  ;;  %v311_v51 = vadd.f32 %v310_v43, %v309_v35  ;;  %v353_v52 = vadd.f32 %v352_v44, %v351_v36  ;;  %v331_v41 = vld [vmem:[#allocation4] sm:$0xf] }
  0x61   : > { %v317_v53 = vadd.f32 %v316_v45, %v315_v37  ;;  %v336_v54 = vrot.slane %v335_v46, 1  ;;  %v342_v55 = vrot.slane %v341_v47, 1  ;;  %v348_v56 = vrot.slane %v347_v48, 1  ;;  %v242_v45 = vld [vmem:[#allocation2] sm:$0xf] }
  0x62   : > { %v322_v57 = vsel %vm275_vm5, %v305_v50, %v299_v49  ;;  %v354_v58 = vrot.slane %v353_v52, 1  ;;  %v243_v59 = vmul.f32 %v501_v14, %v855_v1  ;;  %v244_v60 = vmul.f32 %v502_v15, %v857_v2 }
  0x63   : > { %v323_v61 = vsel %vm277_vm6, %v311_v51, %v322_v57  ;;  %v337_v62 = vadd.f32 %v336_v54, %v335_v46  ;;  %v343_v63 = vadd.f32 %v342_v55, %v341_v47  ;;  %v349_v0 = vadd.f32 %v348_v56, %v347_v48 }
  0x64   : > { %v324_v5 = vsel %vm279_vm7, %v317_v53, %v323_v61  ;;  %v355_v6 = vadd.f32 %v354_v58, %v353_v52  ;;  %v245_v7 = vmul.f32 %v503_v16, %v859_v3  ;;  %v246_v8 = vmul.f32 %v504_v20, %v861_v4 }
  0x65   : > { %v326_v9 = vsel %vm282_vm8, %v324_v5, 0.0  ;;  %v360_v10 = vsel %vm275_vm5, %v343_v63, %v337_v62  ;;  %v247_v11 = vrot.slane %v243_v59, 4  ;;  %v253_v1 = vrot.slane %v244_v60, 4 }
  0x66   : > { %327 = vadd.xlane.f32.xlu0 %v326_v9  ;;  %v361_v2 = vsel %vm277_vm6, %v349_v0, %v360_v10  ;;  %v259_v12 = vrot.slane %v245_v7, 4  ;;  %v265_v13 = vrot.slane %v246_v8, 4  ;;  %vm383_vm9 = vcmask 7168  }
  0x67   : > { %v362_v14 = vsel %vm279_vm7, %v355_v6, %v361_v2  ;;  %v248_v15 = vadd.f32 %v247_v11, %v243_v59  ;;  %v254_v17 = vadd.f32 %v253_v1, %v244_v60  ;;  %vm385_vm10 = vcmask 15360  }
  0x68   : > { %v364_v18 = vsel %vm282_vm8, %v362_v14, 0.0  ;;  %v260_v3 = vadd.f32 %v259_v12, %v245_v7  ;;  %v266_v16 = vadd.f32 %v265_v13, %v246_v8  ;;  %vm387_vm11 = vcmask 19456  }
  0x69   : > { %v249_v4 = vrot.slane %v248_v15, 2  ;;  %v255_v19 = vrot.slane %v254_v17, 2 }
  0x6a   : > { %365 = vadd.xlane.f32.xlu0 %v364_v18  ;;  %v261_v20 = vrot.slane %v260_v3, 2  ;;  %v267_v21 = vrot.slane %v266_v16, 2 }
  0x6b   : > { %v250_v22 = vadd.f32 %v249_v4, %v248_v15  ;;  %v256_v23 = vadd.f32 %v255_v19, %v254_v17 }
  0x6c   : > { %v262_v24 = vadd.f32 %v261_v20, %v260_v3  ;;  %v268_v25 = vadd.f32 %v267_v21, %v266_v16 }
  0x6d   : > { %v251_v26 = vrot.slane %v250_v22, 1  ;;  %v257_v27 = vrot.slane %v256_v23, 1 }
  0x6e   : > { %v263_v28 = vrot.slane %v262_v24, 1  ;;  %v269_v29 = vrot.slane %v268_v25, 1 }
  0x6f   : > { %v252_v30 = vadd.f32 %v251_v26, %v250_v22  ;;  %v258_v31 = vadd.f32 %v257_v27, %v256_v23 }
  0x70   : > { %v264_v32 = vadd.f32 %v263_v28, %v262_v24  ;;  %v270_v33 = vadd.f32 %v269_v29, %v268_v25 }
  0x71   : > { %v276_v34 = vsel %vm275_vm5, %v258_v31, %v252_v30 }
  0x72   : > { %v278_v35 = vsel %vm277_vm6, %v264_v32, %v276_v34 }
  0x73   : > { %v280_v36 = vsel %vm279_vm7, %v270_v33, %v278_v35 }
  0x74   : > { %v283_v37 = vsel %vm282_vm8, %v280_v36, 0.0 }
  0x75   : > { %284 = vadd.xlane.f32.xlu1 %v283_v37 }
  0xf3   : > { %v328_v39 = vpop.xlane.xlu0 %327 }
  0xf4   : > { %v329_v40 = vadd.f32 %v328_v39, %v289_v38 }
  0xf6   : > { %330 = vst.msk [vmem:[#allocation3] sm:$0xf] %vm221_vm0, %v329_v40 }
  0xf7   : > { %v366_v42 = vpop.xlane.xlu0 %365 }
  0xf8   : > { %v367_v43 = vadd.f32 %v366_v42, %v331_v41 }
  0xfa   : > { %368 = vst.msk [vmem:[#allocation4] sm:$0xf] %vm221_vm0, %v367_v43 }
  0xfd   : > { %v373_v44 = vld [vmem:[#allocation3] sm:$0xf] }
  0xfe   : > { %376 = vrot.lane.b32.xlu1 %v373_v44, %s694_s20 }
 0x101   : > { %v374_v46 = vld [vmem:[#allocation4] sm:$0xf] }
 0x102   : > { %380 = vrot.lane.b32.xlu0 %v374_v46, %s695_s26  ;;  %v285_v47 = vpop.xlane.xlu1 %284 }
 0x103   : > { %v286_v48 = vadd.f32 %v285_v47, %v242_v45 }
 0x105   : > { %288 = vst.msk [vmem:[#allocation2] sm:$0xf] %vm221_vm0, %v286_v48 }
 0x10c   : > { %v372_v50 = vld [vmem:[#allocation2] sm:$0xf] }
 0x170   : > { %v377_v49 = vpop.permute.xlu1 %376 }
 0x171   : > { %v384_v51 = vsel %vm383_vm9, %v372_v50, %v377_v49 }
 0x174   : > { %v381_v52 = vpop.permute.xlu0 %380 }
 0x175   : > { %v386_v53 = vsel %vm385_vm10, %v384_v51, %v381_v52 }
 0x176   : > { %388 = vst.msk [vmem:[%s216_s3] sm:$0xf] %vm387_vm11, %v386_v53 }
 0x177 PF: > { %s18_s14 = sadd.s32 1, %s687_s14   ;;  %s923_s9 = smov %s671_s10 }
 0x178   : > { %p15_p9 = scmp.ge.s32.totalorder %s18_s14, 4   ;;  %s924_s10 = smov %s675_s11 }
 0x179   : > { %s925_s11 = smov %s760_s21  ;;  %s926_s12 = smov %s683_s13 }
 0x17a   : > { %s927_s13 = smov %s929_s16  ;;  %17 = sbr.rel (!%p15_p9) target bundleno = 6 (0x6), region = 89 }
 0x181   :  { %408 = vsyncpa [#allocation6], 1 }
 0x182   :  { %410 = vsyncpa [#allocation6 + $0x1], 1 }
 0x183   :  { %411 = vsyncpa [#allocation8], 1 }
 0x184   :  { %413 = vsyncpa [#allocation8 + $0x1], 1 }

</bundles_post_ra>
